<compile_context>
chip_gen: v7x
topology: tpu7x:2x2x1
jax: 0.10.0
libtpu: 0.0.40
codegen_flags: <defaults>
</compile_context>

<pallas_src>
import jax
import jax.numpy as jnp
from jax.experimental import pallas as pl
from jax.experimental.pallas import tpu as pltpu


def _round_up(x, m):
    return (x + m - 1) // m * m


def edge_predictor_kernel(x1_ref, x2t_ref, w1t_ref, b1_ref, w2_ref, b2c_ref, out_ref):
    # combine1 = x1 @ W1^T + b1  (W1 pre-transposed in the wrapper -> plain [M,K]x[K,N])
    h1 = jnp.dot(x1_ref[...], w1t_ref[...],
                 preferred_element_type=jnp.float32) + b1_ref[...]
    # combine2^T = W2 @ x2^T + b2[:, None]  -> already (D, N2), no in-kernel transpose
    h2t = jnp.dot(w2_ref[...], x2t_ref[...],
                  preferred_element_type=jnp.float32) + b2c_ref[...]
    # result = combine1 @ combine2^T ; adj_out = sigmoid(result)
    logits = jnp.dot(h1, h2t, preferred_element_type=jnp.float32)
    out_ref[...] = jax.nn.sigmoid(logits).astype(out_ref.dtype)


def edge_predictor(node_embed1, node_embed2, w1, b1, w2, b2):
    """node_embed1: (N1, D), node_embed2: (N2, D).
    w1, w2: (out=D, in=D) PyTorch nn.Linear convention.  b1, b2: (D,) or (1, D).
    Returns sigmoid((x1 @ W1^T + b1) @ (x2 @ W2^T + b2)^T) of shape (N1, N2)."""
    n1, d = node_embed1.shape
    n2, _ = node_embed2.shape

    # Pad so the output tile is (8k, 128k): unmasked lane-dense stores.
    n1p = _round_up(max(n1, 8), 8)
    n2p = _round_up(max(n2, 128), 128)

    x1 = node_embed1.astype(jnp.float32)
    if n1p != n1:
        x1 = jnp.pad(x1, ((0, n1p - n1), (0, 0)))
    x2t = node_embed2.astype(jnp.float32).T          # (D, N2)  (free wrapper-side op)
    if n2p != n2:
        x2t = jnp.pad(x2t, ((0, 0), (0, n2p - n2)))

    w1t = w1.astype(jnp.float32).T                    # (D_in, D_out): no .T in kernel
    w2f = w2.astype(jnp.float32)                      # used as-is for W2 @ x2^T
    b1r = jnp.reshape(b1, (1, d)).astype(jnp.float32)
    b2c = jnp.reshape(b2, (d, 1)).astype(jnp.float32)

    full = lambda shape: pl.BlockSpec(shape, lambda: (0,) * len(shape))

    out_padded = pl.pallas_call(
        edge_predictor_kernel,
        out_shape=jax.ShapeDtypeStruct((n1p, n2p), jnp.float32),
        in_specs=[
            full(x1.shape),    # (N1p, D)
            full(x2t.shape),   # (D, N2p)
            full(w1t.shape),   # (D, D)
            full(b1r.shape),   # (1, D)
            full(w2f.shape),   # (D, D)
            full(b2c.shape),   # (D, 1)
        ],
        out_specs=full((n1p, n2p)),
        compiler_params=pltpu.CompilerParams(vmem_limit_bytes=32 * 1024 * 1024),
    )(x1, x2t, w1t, b1r, w2f, b2c)

    return out_padded[:n1, :n2]


def reference(node_embed1, node_embed2, w1, b1, w2, b2):
    h1 = node_embed1 @ w1.T + jnp.reshape(b1, (1, -1))
    h2 = node_embed2 @ w2.T + jnp.reshape(b2, (1, -1))
    return jax.nn.sigmoid(h1 @ h2.T)


if __name__ == "__main__":
    nembed = 32
    n1, n2 = 16, 8

    key = jax.random.PRNGKey(0)
    k1, k2, k3, k4, k5, k6 = jax.random.split(key, 6)

    node_embed1 = jax.random.normal(k1, (n1, nembed), dtype=jnp.float32)
    node_embed2 = jax.random.normal(k2, (n2, nembed), dtype=jnp.float32)

    # nn.init.normal_(weight, std=0.05); biases use PyTorch's default
    # uniform(-1/sqrt(fan_in), 1/sqrt(fan_in)).
    w1 = 0.05 * jax.random.normal(k3, (nembed, nembed), dtype=jnp.float32)
    w2 = 0.05 * jax.random.normal(k4, (nembed, nembed), dtype=jnp.float32)
    bound = 1.0 / jnp.sqrt(jnp.float32(nembed))
    b1 = jax.random.uniform(k5, (nembed,), minval=-bound, maxval=bound,
                            dtype=jnp.float32)
    b2 = jax.random.uniform(k6, (nembed,), minval=-bound, maxval=bound,
                            dtype=jnp.float32)

    out = edge_predictor(node_embed1, node_embed2, w1, b1, w2, b2)
    out = jax.block_until_ready(out)

    ref = reference(node_embed1, node_embed2, w1, b1, w2, b2)
    assert out.shape == (n1, n2)
    assert jnp.allclose(out, ref, atol=1e-5, rtol=1e-5)

    print("KERNEL_OK")
</pallas_src>

<mosaic_0001>
module attributes {stable_mosaic.version = 11 : i64} {
  func.func @edge_predictor_kernel(%arg0: memref<16x32xf32, #tpu.memory_space<vmem>>, %arg1: memref<32x128xf32, #tpu.memory_space<vmem>>, %arg2: memref<32x32xf32, #tpu.memory_space<vmem>>, %arg3: memref<1x32xf32, #tpu.memory_space<vmem>>, %arg4: memref<32x32xf32, #tpu.memory_space<vmem>>, %arg5: memref<32x1xf32, #tpu.memory_space<vmem>>, %arg6: memref<16x128xf32, #tpu.memory_space<vmem>>) attributes {dimension_semantics = [], scalar_prefetch = 0 : i64, scratch_operands = 0 : i64, tpu.core_type = #tpu.core_type<tc>} {
    %c0 = arith.constant 0 : index
    %c0_0 = arith.constant 0 : index
    %0 = vector.load %arg0[%c0, %c0_0] : memref<16x32xf32, #tpu.memory_space<vmem>>, vector<16x32xf32>
    %c0_1 = arith.constant 0 : index
    %c0_2 = arith.constant 0 : index
    %1 = vector.load %arg2[%c0_1, %c0_2] : memref<32x32xf32, #tpu.memory_space<vmem>>, vector<32x32xf32>
    %cst = arith.constant dense<0.000000e+00> : vector<16x32xf32>
    %2 = tpu.matmul %0, %1, %cst {dimension_numbers = #tpu.dot_dimension_numbers<[1], [0], [0], [1], [0, 0, 1, 1], [], []>} : vector<16x32xf32>, vector<32x32xf32>, vector<16x32xf32> -> vector<16x32xf32>
    %c0_3 = arith.constant 0 : index
    %c0_4 = arith.constant 0 : index
    %3 = vector.load %arg3[%c0_3, %c0_4] : memref<1x32xf32, #tpu.memory_space<vmem>>, vector<1x32xf32>
    %4 = vector.broadcast %3 : vector<1x32xf32> to vector<16x32xf32>
    %5 = arith.addf %2, %4 : vector<16x32xf32>
    %c0_5 = arith.constant 0 : index
    %c0_6 = arith.constant 0 : index
    %6 = vector.load %arg4[%c0_5, %c0_6] : memref<32x32xf32, #tpu.memory_space<vmem>>, vector<32x32xf32>
    %c0_7 = arith.constant 0 : index
    %c0_8 = arith.constant 0 : index
    %7 = vector.load %arg1[%c0_7, %c0_8] : memref<32x128xf32, #tpu.memory_space<vmem>>, vector<32x128xf32>
    %cst_9 = arith.constant dense<0.000000e+00> : vector<32x128xf32>
    %8 = tpu.matmul %6, %7, %cst_9 {dimension_numbers = #tpu.dot_dimension_numbers<[1], [0], [0], [1], [0, 0, 1, 1], [], []>} : vector<32x32xf32>, vector<32x128xf32>, vector<32x128xf32> -> vector<32x128xf32>
    %c0_10 = arith.constant 0 : index
    %c0_11 = arith.constant 0 : index
    %9 = vector.load %arg5[%c0_10, %c0_11] : memref<32x1xf32, #tpu.memory_space<vmem>>, vector<32x1xf32>
    %10 = vector.broadcast %9 : vector<32x1xf32> to vector<32x128xf32>
    %11 = arith.addf %8, %10 : vector<32x128xf32>
    %cst_12 = arith.constant dense<0.000000e+00> : vector<16x128xf32>
    %12 = tpu.matmul %5, %11, %cst_12 {dimension_numbers = #tpu.dot_dimension_numbers<[1], [0], [0], [1], [0, 0, 1, 1], [], []>} : vector<16x32xf32>, vector<32x128xf32>, vector<16x128xf32> -> vector<16x128xf32>
    %13 = arith.negf %12 : vector<16x128xf32>
    %14 = math.exp %13 : vector<16x128xf32>
    %cst_13 = arith.constant 1.000000e+00 : f32
    %15 = vector.broadcast %cst_13 : f32 to vector<16x128xf32>
    %16 = arith.addf %15, %14 : vector<16x128xf32>
    %17 = arith.divf %15, %16 : vector<16x128xf32>
    %c0_14 = arith.constant 0 : index
    %c0_15 = arith.constant 0 : index
    %18 = vector.load %arg6[%c0_14, %c0_15] : memref<16x128xf32, #tpu.memory_space<vmem>>, vector<16x128xf32>
    tpu.vector_store %arg6[%c0_14, %c0_15], %17 {strides = array<i32>} : memref<16x128xf32, #tpu.memory_space<vmem>>, vector<16x128xf32>,
    return
  }
}

</mosaic_0001>

<bundles_post_ra>
// kernel: tpu_custom_call.1
= control target key start
LH: loop header
LB: loop body
LE: loop exit
PB: predicated region body
PF: predicated region fallthrough
CT: control target
= control target key end

     0   :  { %11 = vsyncpa [#allocation3], 0  ;;  %s748_s0 = inlined_call_operand.hbm [shape: f32[16,32], index: 0, kind: input, shape index: {}]   ;;  %s749_s1 = inlined_call_operand.vmem [shape: f32[32,128], index: 1, kind: input, shape index: {}]   ;;  %s750_s2 = inlined_call_operand.hbm [shape: f32[32,32], index: 2, kind: input, shape index: {}]   ;;  %s751_s3 = inlined_call_operand.vmem [shape: f32[1,32], index: 3, kind: input, shape index: {}]   ;;  %s752_s4 = inlined_call_operand.hbm [shape: f32[32,32], index: 4, kind: input, shape index: {}]   ;;  %s753_s5 = inlined_call_operand.vmem [shape: f32[32,1], index: 5, kind: input, shape index: {}]   ;;  %s754_s6 = inlined_call_operand.hbm [shape: f32[16,128], index: 6, kind: output, shape index: {}]  }
   0x1   :  { %12 = vsyncpa [#allocation6], 0 }
   0x2   :  { %13 = vsyncpa [#allocation4], 0  ;;  %s604_s21 = smov [#allocation5]   ;;  %s605_s23 = smov [#allocation2]  }
   0x3   :  { %s33_s22 = sshll.u32 %s604_s21, 4  ;;  %s19_s24 = sshll.u32 %s605_s23, 4  ;;  %s34_s22 = int_to_ptr.vmem [resolvable:$true] %s33_s22  ;;  %s646_s24 = int_to_ptr.vmem [resolvable:$true] %s19_s24 }
   0x4   :  { %s510_s27 = scalar_lea.hbm %s750_s2, 512 }
   0x5   :  { %p511_p0 = scmp.ne.s32.totalorder %s750_s2, %s510_s27  ;;  %p514_p1 = scmp.lt.u32.totalorder %s510_s27, %s750_s2 }
   0x7   :  { %p516_p2 = pnand %p514_p1, %p511_p0 }
   0x9   :  { %519 = shalt.err (!%p516_p2)
}
   0xa   :  { %s520_s8 = scalar_lea.vmem %s34_s22, 512  ;;  %p525_p4 = scmp.lt.s32.totalorder %s34_s22, %s34_s22 }
   0xb   :  { %p521_p3 = scmp.ne.s32.totalorder %s34_s22, %s520_s8  ;;  %p526_p5 = scmp.lt.s32.totalorder %s520_s8, %s520_s8 }
   0xd   :  { %p527_p6 = por %p526_p5, %p525_p4 }
   0xf   :  { %p528_p7 = pnand %p527_p6, %p521_p3 }
  0x11   :  { %531 = shalt.err (!%p528_p7)
}
  0x12   :  { %s606_s9 = smov 128   ;;  %s607_s10 = smov 8  }
  0x13   :  { %39 = dma.hbm_to_vmem [thread:$0]  %s750_s2, 512, %s34_s22, [#allocation6], %s606_s9, %s606_s9, %s607_s10  }
  0x14   :  { %s532_s15 = scalar_lea.hbm %s748_s0, 256 }
  0x15   :  { %p533_p8 = scmp.ne.s32.totalorder %s748_s0, %s532_s15  ;;  %p536_p9 = scmp.lt.u32.totalorder %s532_s15, %s748_s0 }
  0x17   :  { %p538_p10 = pnand %p536_p9, %p533_p8 }
  0x19   :  { %541 = shalt.err (!%p538_p10)
}
  0x1a   :  { %s542_s20 = scalar_lea.vmem %s646_s24, 256  ;;  %p547_p12 = scmp.lt.s32.totalorder %s646_s24, %s646_s24 }
  0x1b   :  { %p543_p11 = scmp.ne.s32.totalorder %s646_s24, %s542_s20  ;;  %p548_p13 = scmp.lt.s32.totalorder %s542_s20, %s542_s20 }
  0x1d   :  { %p549_p0 = por %p548_p13, %p547_p12 }
  0x1f   :  { %p550_p1 = pnand %p549_p0, %p543_p11 }
  0x21   :  { %553 = shalt.err (!%p550_p1)
}
  0x22   :  { %25 = dma.hbm_to_vmem [thread:$0]  %s748_s0, 256, %s646_s24, [#allocation3], %s606_s9, %s606_s9, %s607_s10  }
  0x23   :  { %s608_s22 = smov [#allocation7]   ;;  %s554_s27 = scalar_lea.hbm %s752_s4, 512 }
  0x24   :  { %s47_s23 = sshll.u32 %s608_s22, 4  ;;  %p555_p2 = scmp.ne.s32.totalorder %s752_s4, %s554_s27  ;;  %s48_s23 = int_to_ptr.vmem [resolvable:$true] %s47_s23 }
  0x25   :  { %p558_p3 = scmp.lt.u32.totalorder %s554_s27, %s752_s4 }
  0x27   :  { %p560_p4 = pnand %p558_p3, %p555_p2 }
  0x29   :  { %563 = shalt.err (!%p560_p4)
}
  0x2a   :  { %s564_s8 = scalar_lea.vmem %s48_s23, 512  ;;  %p569_p6 = scmp.lt.s32.totalorder %s48_s23, %s48_s23 }
  0x2b   :  { %p565_p5 = scmp.ne.s32.totalorder %s48_s23, %s564_s8  ;;  %p570_p7 = scmp.lt.s32.totalorder %s564_s8, %s564_s8 }
  0x2d   :  { %p571_p8 = por %p570_p7, %p569_p6 }
  0x2f   :  { %p572_p9 = pnand %p571_p8, %p565_p5 }
  0x31   :  { %575 = shalt.err (!%p572_p9)
}
  0x32   :  { %53 = dma.hbm_to_vmem [thread:$0]  %s752_s4, 512, %s48_s23, [#allocation6], %s606_s9, %s606_s9, %s607_s10  }
  0x33   :  { %598 = dma.done.wait [#allocation3], 256  }
  0x34   :  { %599 = vsyncadd [#allocation3], 4294967040 }
  0x35   :  { %600 = dma.done.wait [#allocation6], 1024  }
  0x36   :  { %601 = vsyncadd [#allocation6], 4294966272  ;;  %v609_v0 = vmov 0   ;;  %vm78_vm0 = vcmask 261120   ;;  %v164_v1 = vld [vmem:[%s749_s1] sm:$0xff]  ;;  %v165_v2 = vld [vmem:[%s749_s1 + $0x8] sm:$0xff] }
  0x37   :  { %500 = vset.pattern.permute.xlu0 %v609_v0  ;;  %501 = vset.pattern.permute.xlu1 %v609_v0  ;;  %v166_v3 = vld [vmem:[%s749_s1 + $0x10] sm:$0xff]  ;;  %v477_v4 = vpack.c.bf16 %v165_v2, %v164_v1  ;;  %v167_v5 = vld [vmem:[%s749_s1 + $0x18] sm:$0xff]  ;;  %v69_v11 = vld [vmem:[#allocation5 + $0x10] sm:$0xff] }
  0x38   :  { %v160_v6 = vld [vmem:[#allocation7] sm:$0xff]  ;;  %v481_v8 = vpack.c.bf16 %v167_v5, %v166_v3  ;;  %v68_v9 = vld [vmem:[#allocation5 + $0x8] sm:$0xff]  ;;  %v70_v12 = vld [vmem:[#allocation5 + $0x18] sm:$0xff] }
  0x39   :  { %v67_v7 = vld [vmem:[#allocation5] sm:$0xff]  ;;  %452 = vmatprep.mubr.msk.f32.mxu1 %vm78_vm0, %v160_v6  ;;  %478 = vmatprep.subr.bf16.mxu1 %v477_v4  ;;  %v473_v13 = vpack.c.bf16 %v70_v12, %v69_v11  ;;  %v65_v14 = vld [vmem:[#allocation2] sm:$0xff]  ;;  %v161_v17 = vld [vmem:[#allocation7 + $0x8] sm:$0xff] }
  0x3a   :  { %v469_v10 = vpack.c.bf16 %v68_v9, %v67_v7  ;;  %480 = vmatpush3.bf16.msra.mxu1 %v477_v4  ;;  %v168_v15 = vld [vmem:[%s753_s5] sm:$0xff]  ;;  %v170_v16 = vld [vmem:[%s753_s5 + $0x10] sm:$0xff]  ;;  %441 = vmatprep.mubr.msk.f32.mxu0 %vm78_vm0, %v65_v14  ;;  %v169_v18 = vld [vmem:[%s753_s5 + $0x8] sm:$0xff] }
  0x3b   :  { %482 = vmatprep.subr.bf16.mxu1 %v481_v8  ;;  %174 = vperm.xlu0 %500, %v168_v15   ;;  %v162_v19 = vld [vmem:[#allocation7 + $0x10] sm:$0xff]  ;;  %v171_v20 = vld [vmem:[%s753_s5 + $0x18] sm:$0xff]  ;;  %v66_v21 = vld [vmem:[#allocation2 + $0x8] sm:$0xff] }
  0x3c   :  { %470 = vmatprep.subr.bf16.mxu0 %v469_v10  ;;  %184 = vperm.xlu1 %501, %v170_v16   ;;  %v163_v22 = vld [vmem:[#allocation7 + $0x18] sm:$0xff]  ;;  %v402_v29 = vld [vmem:[%s751_s3] ss:$0 sm:$0xff]  ;;  %s610_s3 = smov [#allocation8]  }
  0x3d   :  { %472 = vmatpush3.bf16.msra.mxu0 %v469_v10  ;;  %s389_s26 = sshll.u32 %s610_s3, 4  ;;  %s390_s26 = int_to_ptr.vmem [resolvable:$true] %s389_s26 }
  0x3e   :  { %474 = vmatprep.subr.bf16.mxu0 %v473_v13  ;;  %484 = vmatpush3.bf16.msra.mxu1 %v481_v8  ;;  %s576_s27 = scalar_lea.vmem %s390_s26, 256  ;;  %p581_p11 = scmp.lt.s32.totalorder %s390_s26, %s390_s26 }
  0x3f   :  { %179 = vperm.xlu0 %500, %v169_v18   ;;  %p577_p10 = scmp.ne.s32.totalorder %s390_s26, %s576_s27  ;;  %p582_p12 = scmp.lt.s32.totalorder %s576_s27, %s576_s27 }
  0x40   :  { %189 = vperm.xlu1 %501, %v171_v20  }
  0x41   :  { %476 = vmatpush3.bf16.msra.mxu0 %v473_v13  ;;  %453 = vmatmul.mubr.msk.f32.vlgmr.msra.gmra.mrb[0].mxu1 %vm78_vm0, %v161_v17  ;;  %p583_p13 = por %p582_p12, %p581_p11 }
  0x42   :  { %455 = vmatprep.mubr.msk.f32.mxu1 %vm78_vm0, %v162_v19 }
  0x43   :  { %p584_p0 = pnand %p583_p13, %p577_p10 }
  0x44   :  { %442 = vmatmul.mubr.msk.f32.vlgmr.msra.gmra.mrb[0].mxu0 %vm78_vm0, %v66_v21 }
  0x45   :  { %456 = vmatmul.mubr.msk.f32.gmra.mrb[2].mxu1 %vm78_vm0, %v163_v22 }
  0xba   :  { %v175_v23 = vpop.permute.xlu0 %174 }
  0xbb   :  { %v185_v24 = vpop.permute.xlu1 %184 }
  0xbe   :  { %v180_v25 = vpop.permute.xlu0 %179 }
  0xbf   :  { %v190_v33 = vpop.permute.xlu1 %189 }
 0x114   :  { %v454_v26 = vpop.f32.mrb[0].mxu1 }
 0x115   :  { %v276_v27 = vadd.f32 %v454_v26, %v180_v25  ;;  %v270_v28 = vpop.f32.mrb[1].mxu1 }
 0x116   :  { %v271_v30 = vadd.f32 %v270_v28, %v175_v23 }
 0x117   :  { %v443_v31 = vpop.f32.mrb[0].mxu0 }
 0x118   :  { %v151_v32 = vpop.f32.mrb[1].mxu0  ;;  %v485_v34 = vpack.c.bf16 %v276_v27, %v271_v30  ;;  %v457_v35 = vpop.f32.mrb[2].mxu1  ;;  %v157_v41 = vadd.f32 %v443_v31, %v402_v29 }
 0x119   :  { %v152_v36 = vadd.f32 %v402_v29, %v151_v32  ;;  %v286_v37 = vadd.f32 %v457_v35, %v190_v33  ;;  %v280_v38 = vpop.f32.mrb[3].mxu1 }
 0x11a   :  { %v281_v39 = vadd.f32 %v280_v38, %v185_v24  ;;  %486 = vmatprep.subr.bf16.mxu0 %v485_v34 }
 0x11b   :  { %466 = vmatprep.mubr.msk.f32.mxu0 %vm78_vm0, %v152_v36  ;;  %488 = vmatpush3.bf16.msra.mxu0 %v485_v34 }
 0x11c   :  { %v489_v40 = vpack.c.bf16 %v286_v37, %v281_v39 }
 0x11e   :  { %490 = vmatprep.subr.bf16.mxu0 %v489_v40 }
 0x11f   :  { %492 = vmatpush3.bf16.msra.mxu0 %v489_v40 }
 0x122   :  { %467 = vmatmul.mubr.msk.f32.vlgmr.msra.gmra.mrb[2].mxu0 %vm78_vm0, %v157_v41 }
 0x1f5   :  { %v468_v42 = vpop.f32.mrb[2].mxu0 }
 0x1f6   :  { %v412_v43 = vmul.f32 -1.442695, %v468_v42  ;;  %v361_v44 = vpop.f32.mrb[3].mxu0 }
 0x1f7   :  { %v411_v45 = vmul.f32 -1.442695, %v361_v44 }
 0x1f8   :  { %502 = vpow2.f32 %v412_v43 }
 0x1f9   :  { %504 = vpow2.f32 %v411_v45 }
 0x202   :  { %v503_v46 = vpop.eup %502 }
 0x203   :  { %v505_v47 = vpop.eup %504  ;;  %v377_v48 = vadd.f32 1.0, %v503_v46 }
 0x204   :  { %v376_v49 = vadd.f32 1.0, %v505_v47 }
 0x205   :  { %506 = vrcp.f32 %v377_v48 }
 0x206   :  { %508 = vrcp.f32 %v376_v49 }
 0x20f   :  { %v507_v50 = vpop.eup %506 }
 0x210   :  { %v509_v51 = vpop.eup %508  ;;  %383 = vst [vmem:[#allocation8 + $0x8] sm:$0xff] %v507_v50 }
 0x211   :  { %382 = vst [vmem:[#allocation8] sm:$0xff] %v509_v51 }
 0x212   :  { %587 = shalt.err (!%p584_p0)
}
 0x213   :  { %s588_s30 = scalar_lea.hbm %s754_s6, 256 }
 0x214   :  { %p589_p1 = scmp.ne.s32.totalorder %s754_s6, %s588_s30  ;;  %p592_p2 = scmp.lt.u32.totalorder %s588_s30, %s754_s6 }
 0x216   :  { %p594_p3 = pnand %p592_p2, %p589_p1 }
 0x218   :  { %597 = shalt.err (!%p594_p3)
}
 0x219   :  { %395 = dma.vmem_to_hbm [thread:$0]  %s390_s26, 256, %s754_s6, [#allocation4], %s606_s9, %s606_s9, %s607_s10  }
 0x21a   :  { %602 = dma.done.wait [#allocation4], 256  }
 0x21b   :  { %603 = vsyncadd [#allocation4], 4294967040 }
 0x21c   :  { %399 = vsyncpa [#allocation3], 1 }
 0x21d   :  { %400 = vsyncpa [#allocation6], 1 }
 0x21e   :  { %401 = vsyncpa [#allocation4], 1 }

</bundles_post_ra>
